<compile_context>
chip_gen: v6e
topology: v6e:2x2x1
jax: 0.10.0
libtpu: 0.0.40
codegen_flags: <defaults>
</compile_context>

<pallas_src>
import jax
import jax.numpy as jnp
from jax.experimental import pallas as pl
from jax.experimental.pallas import tpu as pltpu

_TARGET_BLOCK_BYTES = 4 * 1024 * 1024   # ~4 MiB per buffer (safe on v7x 64 MiB VMEM)


def _linreg_kernel(params_ref, x_ref, o_ref):
    # params_ref: (2,) float32 in SMEM -> [weight, bias]
    x = x_ref[...]
    if x.dtype == jnp.bfloat16:
        # v6e/v7x VALUs are bf16-native: compute packed, no f32 upcast.
        w = params_ref[0].astype(jnp.bfloat16)
        b = params_ref[1].astype(jnp.bfloat16)
        o_ref[...] = (w * x + b).astype(o_ref.dtype)
    else:
        w = params_ref[0]
        b = params_ref[1]
        o_ref[...] = (w * x.astype(jnp.float32) + b).astype(o_ref.dtype)


def _pick_lane(n: int) -> int:
    # Largest lane-dense width (multiple of 128) that divides n; fall back to
    # 128 and let the wrapper handle the (<128 element) tail with plain jnp.
    for cand in (512, 256, 128):
        if n % cand == 0:
            return cand
    return 128


def simple_linear_regression(data: jax.Array, weight, bias) -> jax.Array:
    """y = weight * data + bias, computed in a tiled, pipelined Pallas TPU kernel."""
    orig_shape = data.shape
    orig_dtype = data.dtype
    n = data.size
    itemsize = jnp.dtype(orig_dtype).itemsize

    params = jnp.stack(
        [jnp.asarray(weight, jnp.float32), jnp.asarray(bias, jnp.float32)]
    )

    # --- layout plumbing: flatten -> (rows, lane) slab, no padding copies ---
    lane = _pick_lane(n)
    n_main = (n // lane) * lane           # kernel-processed prefix
    tail = n - n_main                     # < 128 elements, handled outside

    flat = data.reshape(-1)

    out_parts = []
    if n_main > 0:
        rows = n_main // lane
        x2d = flat[:n_main].reshape(rows, lane)

        # ~4 MiB per buffer; row tile must be a multiple of 8 (or full extent).
        tr_cap = max(8, (_TARGET_BLOCK_BYTES // (lane * itemsize)) // 8 * 8)
        tr = min(tr_cap, rows)
        if tr != rows:
            tr = max(8, (tr // 8) * 8)

        # v7x has 2 TensorCores: make sure the grid has >= 2 blocks when the
        # slab is big enough to split into multiple-of-8 row tiles.
        if pl.cdiv(rows, tr) == 1 and rows >= 16:
            half = (((rows + 1) // 2) + 7) // 8 * 8
            if 8 <= half < rows:
                tr = half

        grid = (pl.cdiv(rows, tr),)

        out2d = pl.pallas_call(
            _linreg_kernel,
            out_shape=jax.ShapeDtypeStruct((rows, lane), orig_dtype),
            grid=grid,
            in_specs=[
                pl.BlockSpec(memory_space=pltpu.SMEM),        # (2,) [weight, bias]
                pl.BlockSpec((tr, lane), lambda i: (i, 0)),   # data tile in VMEM
            ],
            out_specs=pl.BlockSpec((tr, lane), lambda i: (i, 0)),
            compiler_params=pltpu.CompilerParams(
                dimension_semantics=("parallel",),            # shards across TCs on v7x
                vmem_limit_bytes=32 * 1024 * 1024,            # 16 MiB working set + headroom
            ),
            cost_estimate=pl.CostEstimate(
                flops=2 * n_main,
                transcendentals=0,
                bytes_accessed=2 * n_main * itemsize,
            ),
        )(params, x2d)
        out_parts.append(out2d.reshape(-1))

    if tail > 0:
        # Sub-128-element tail: plain jnp, matches kernel arithmetic/dtype.
        t = flat[n_main:]
        if orig_dtype == jnp.bfloat16:
            t_out = (params[0].astype(jnp.bfloat16) * t
                     + params[1].astype(jnp.bfloat16)).astype(orig_dtype)
        else:
            t_out = (params[0] * t.astype(jnp.float32) + params[1]).astype(orig_dtype)
        out_parts.append(t_out)

    out_flat = out_parts[0] if len(out_parts) == 1 else jnp.concatenate(out_parts)
    return out_flat.reshape(orig_shape)


if __name__ == "__main__":
    # Deterministic parameters matching the PyTorch module's __init__:
    # weights = 1.0, bias = 1.0 (scalar nn.Parameters).
    weight = jnp.float32(1.0)
    bias = jnp.float32(1.0)

    # Small example input (NCHW-style, as PyTorch would typically feed).
    key = jax.random.PRNGKey(0)
    x = jax.random.normal(key, (2, 4, 16, 16), dtype=jnp.float32)

    y = simple_linear_regression(x, weight, bias)
    y = jax.block_until_ready(y)

    # Reference check against plain JAX.
    y_ref = weight * x + bias
    assert y.shape == x.shape and y.dtype == x.dtype
    assert jnp.allclose(y, y_ref, atol=1e-6, rtol=1e-6)

    print("KERNEL_OK")
</pallas_src>

<mosaic_0001>
module attributes {stable_mosaic.version = 11 : i64} {
  func.func @_linreg_kernel(%arg0: i32, %arg1: memref<2xf32, #tpu.memory_space<smem>>, %arg2: memref<4x512xf32, #tpu.memory_space<vmem>>, %arg3: memref<4x512xf32, #tpu.memory_space<vmem>>) attributes {dimension_semantics = [#tpu.dimension_semantics<parallel>], iteration_bounds = array<i64: 1>, scalar_prefetch = 0 : i64, scratch_operands = 0 : i64, tpu.core_type = #tpu.core_type<tc>, window_params = [{transform_indices = @transform_0, window_bounds = array<i64: 2>}, {transform_indices = @transform_1, window_bounds = array<i64: 4, 512>}, {transform_indices = @transform_2, window_bounds = array<i64: 4, 512>}]} {
    %c0 = arith.constant 0 : index
    %c0_0 = arith.constant 0 : index
    %0 = vector.load %arg2[%c0, %c0_0] : memref<4x512xf32, #tpu.memory_space<vmem>>, vector<4x512xf32>
    %c0_1 = arith.constant 0 : index
    %1 = memref.load %arg1[%c0_1] : memref<2xf32, #tpu.memory_space<smem>>
    %c1 = arith.constant 1 : index
    %2 = memref.load %arg1[%c1] : memref<2xf32, #tpu.memory_space<smem>>
    %3 = vector.broadcast %1 : f32 to vector<4x512xf32>
    %4 = arith.mulf %3, %0 : vector<4x512xf32>
    %5 = vector.broadcast %2 : f32 to vector<4x512xf32>
    %6 = arith.addf %4, %5 : vector<4x512xf32>
    %c0_2 = arith.constant 0 : index
    %c0_3 = arith.constant 0 : index
    %7 = vector.load %arg3[%c0_2, %c0_3] : memref<4x512xf32, #tpu.memory_space<vmem>>, vector<4x512xf32>
    tpu.vector_store %arg3[%c0_2, %c0_3], %6 {strides = array<i32>} : memref<4x512xf32, #tpu.memory_space<vmem>>, vector<4x512xf32>,
    return
  }
  func.func @transform_0(%arg0: i32) -> i32 {
    %c0_i32 = arith.constant 0 : i32
    %c0_i32_0 = arith.constant 0 : i32
    return %c0_i32 : i32
  }
  func.func @transform_1(%arg0: i32) -> (i32, i32) {
    %c0_i32 = arith.constant 0 : i32
    %c0_i32_0 = arith.constant 0 : i32
    return %arg0, %c0_i32 : i32, i32
  }
  func.func @transform_2(%arg0: i32) -> (i32, i32) {
    %c0_i32 = arith.constant 0 : i32
    %c0_i32_0 = arith.constant 0 : i32
    return %arg0, %c0_i32 : i32, i32
  }
}

</mosaic_0001>

<bundles_post_ra>
// kernel: tpu_custom_call.1
= control target key start
LH: loop header
LB: loop body
LE: loop exit
PB: predicated region body
PF: predicated region fallthrough
CT: control target
= control target key end

     0   :  { %7 = vsyncpa [#allocation5], 0  ;;  %s148_s0 = inlined_call_operand.hbm [shape: f32[2], index: 0, kind: input, shape index: {}]   ;;  %s149_s1 = inlined_call_operand.hbm [shape: f32[4,512], index: 1, kind: input, shape index: {}]   ;;  %s150_s2 = inlined_call_operand.hbm [shape: f32[4,512], index: 2, kind: output, shape index: {}]  }
   0x1   :  { %8 = vsyncpa [#allocation3], 0 }
   0x2   :  { %9 = vsyncpa [#allocation4], 0  ;;  %s121_s9 = smov [#allocation2]   ;;  %s122_s12 = smov [#allocation6]  }
   0x3   :  { %17 = dma.hbm_to_smem %s148_s0, 16, %s121_s9, [#allocation5]  }
   0x4   :  { %s24_s13 = sshll.u32 %s122_s12, 4  ;;  %s25_s13 = int_to_ptr.vmem [resolvable:$true] %s24_s13 }
   0x5   :  { %s83_s14 = scalar_lea.vmem %s25_s13, 256  ;;  %p88_p1 = scmp.lt.s32.totalorder %s25_s13, %s25_s13 }
   0x6   :  { %p84_p0 = scmp.ne.s32.totalorder %s25_s13, %s83_s14  ;;  %p89_p2 = scmp.lt.s32.totalorder %s83_s14, %s83_s14 }
   0x8   :  { %p90_p3 = por %p89_p2, %p88_p1 }
   0xa   :  { %p91_p4 = pnand %p90_p3, %p84_p0 }
   0xc   :  { %94 = shalt.err (!%p91_p4)
}
   0xd   :  { %27 = dma.hbm_to_vmem [thread:$0]  %s149_s1, 256, %s25_s13, [#allocation3]  }
   0xe   :  { %115 = dma.done.wait [#allocation5], 16  }
   0xf   :  { %116 = vsyncadd [#allocation5], 4294967280 }
  0x10   :  { %117 = dma.done.wait [#allocation3], 256  }
  0x11   :  { %118 = vsyncadd [#allocation3], 4294967040 }
  0x12   :  { %34 = sfence }
  0x13   :  { %s37_s0 = sld [smem:[#allocation2]]  ;;  %v35_v0 = vld [vmem:[#allocation6] sm:$0xff]  ;;  %v36_v1 = vld [vmem:[#allocation6 + $0x8] sm:$0xff]  ;;  %s123_s18 = smov [#allocation7]  }
  0x14   :  { %s63_s17 = sld [smem:[#allocation2 + $0x1]]  ;;  %s53_s19 = sshll.u32 %s123_s18, 4  ;;  %s54_s19 = int_to_ptr.vmem [resolvable:$true] %s53_s19 }
  0x15   :  { %s95_s1 = scalar_lea.vmem %s54_s19, 256  ;;  %p100_p6 = scmp.lt.s32.totalorder %s54_s19, %s54_s19 }
  0x16   :  { %p96_p5 = scmp.ne.s32.totalorder %s54_s19, %s95_s1  ;;  %p101_p7 = scmp.lt.s32.totalorder %s95_s1, %s95_s1 }
  0x18   :  { %p102_p8 = por %p101_p7, %p100_p6 }
  0x19   :  { %v39_v2 = vstv %s37_s0 }
  0x1a   :  { %v40_v3 = vmul.f32 %v39_v2, %v35_v0  ;;  %v42_v4 = vstv %s63_s17  ;;  %v41_v5 = vmul.f32 %v39_v2, %v36_v1  ;;  %p103_p9 = pnand %p102_p8, %p96_p5 }
  0x1c   :  { %v43_v6 = vadd.f32 %v42_v4, %v40_v3  ;;  %v44_v7 = vadd.f32 %v42_v4, %v41_v5 }
  0x1e   :  { %45 = vst [vmem:[#allocation7] sm:$0xff] %v43_v6  ;;  %46 = vst [vmem:[#allocation7 + $0x8] sm:$0xff] %v44_v7 }
  0x1f   :  { %106 = shalt.err (!%p103_p9)
}
  0x20   :  { %56 = dma.vmem_to_hbm [thread:$0]  %s54_s19, 256, %s150_s2, [#allocation4]  }
  0x21   :  { %119 = dma.done.wait [#allocation4], 256  }
  0x22   :  { %120 = vsyncadd [#allocation4], 4294967040 }
  0x23   :  { %60 = vsyncpa [#allocation3], 1 }
  0x24   :  { %61 = vsyncpa [#allocation4], 1 }
  0x25   :  { %62 = vsyncpa [#allocation5], 1 }

</bundles_post_ra>
